<compile_context>
chip_gen: v7x
topology: tpu7x:2x2x1
jax: 0.10.0
libtpu: 0.0.40
codegen_flags: <defaults>
</compile_context>

<pallas_src>
import jax
import jax.numpy as jnp
from jax.experimental import pallas as pl
from jax.experimental.pallas import tpu as pltpu


def _linear_relu_kernel(x_ref, w_ref, b_ref, o_ref):
    # y = relu(x @ W + b); W already [num_feat, dim_hidden] (canonical MXU RHS).
    x = x_ref[...].astype(jnp.bfloat16)                       # bf16 multiplicands
    acc = jnp.dot(x, w_ref[...], preferred_element_type=jnp.float32)  # f32 acc
    o_ref[...] = jnp.maximum(acc + b_ref[...], 0.0).astype(o_ref.dtype)


def binary_pattern_embedding(x, weight, bias, *, block_batch=2048,
                             gridless_batch=256):
    """Pallas equivalent of BinaryPatternEmbedding.forward.

    x:      [batch, num_feat]       float32
    weight: [dim_hidden, num_feat]  (PyTorch nn.Linear layout)
    bias:   [dim_hidden]
    returns [batch, dim_hidden]
    """
    batch, num_feat = x.shape
    dim_hidden = weight.shape[0]

    # One-time wrapper-side relayout of the (tiny) parameters: transpose W to
    # [num_feat, dim_hidden] (lane-dense, canonical contraction) and cast to
    # bf16.  No hidden-dim padding anywhere: the output stays [batch, dim_hidden].
    w_t = weight.T.astype(jnp.bfloat16)                   # [num_feat, dim_hidden]
    b2 = bias.reshape(1, dim_hidden).astype(jnp.float32)  # 2-D for TPU layout

    out_shape = jax.ShapeDtypeStruct((batch, dim_hidden), x.dtype)

    if batch <= gridless_batch:
        # Tiny problem: no grid, no software pipeline -> no per-step overhead.
        return pl.pallas_call(
            _linear_relu_kernel,
            out_shape=out_shape,
            in_specs=[
                pl.BlockSpec(memory_space=pltpu.MemorySpace.VMEM),
                pl.BlockSpec(memory_space=pltpu.MemorySpace.VMEM),
                pl.BlockSpec(memory_space=pltpu.MemorySpace.VMEM),
            ],
            out_specs=pl.BlockSpec(memory_space=pltpu.MemorySpace.VMEM),
        )(x, w_t, b2)

    # Batch-tiled path: stream x / out over the batch axis only (mem-bound);
    # W and bias are resident (constant index_map).  Tile as large as
    # block_batch but guarantee >= 2 grid steps so the 'parallel' axis can
    # shard across v7x's two TensorCores (neutral on single-TC v5e/v6e).
    # tm kept a multiple of 8 (sublane); the tail block when batch % tm != 0
    # uses Pallas read-pad / write-drop semantics.
    tm = min(block_batch, max(8, pl.cdiv(batch, 2)))
    tm = ((tm + 7) // 8) * 8
    grid = (pl.cdiv(batch, tm),)

    return pl.pallas_call(
        _linear_relu_kernel,
        out_shape=out_shape,
        grid_spec=pltpu.PrefetchScalarGridSpec(
            num_scalar_prefetch=0,
            grid=grid,
            in_specs=[
                pl.BlockSpec((tm, num_feat), lambda i: (i, 0)),
                pl.BlockSpec((num_feat, dim_hidden), lambda i: (0, 0)),
                pl.BlockSpec((1, dim_hidden), lambda i: (0, 0)),
            ],
            out_specs=pl.BlockSpec((tm, dim_hidden), lambda i: (i, 0)),
        ),
        compiler_params=pltpu.CompilerParams(
            dimension_semantics=("parallel",)),
    )(x, w_t, b2)


def reference(x, weight, bias):
    # Mirrors the kernel's precision: bf16 multiplicands, f32 accumulation.
    acc = jnp.dot(x.astype(jnp.bfloat16), weight.astype(jnp.bfloat16).T,
                  preferred_element_type=jnp.float32)
    return jnp.maximum(acc + bias[None, :].astype(jnp.float32), 0.0)


if __name__ == "__main__":
    # Shapes implied by the module: x [batch, num_feat] -> [batch, dim_hidden]
    batch, num_feat, dim_hidden = 8, 16, 32

    key = jax.random.PRNGKey(0)
    kx, kw, kb = jax.random.split(key, 3)

    x = jax.random.normal(kx, (batch, num_feat), dtype=jnp.float32)
    # Deterministic synthetic params mimicking the post-clamp regime:
    # weights in [0, 1], bias <= 0.
    weight = jax.random.uniform(kw, (dim_hidden, num_feat), dtype=jnp.float32,
                                minval=0.0, maxval=1.0)
    bias = -jax.random.uniform(kb, (dim_hidden,), dtype=jnp.float32,
                               minval=0.0, maxval=0.5)

    # 1) Small-batch (grid-less) path.
    out = jax.block_until_ready(binary_pattern_embedding(x, weight, bias))
    ref = reference(x, weight, bias)
    assert out.shape == (batch, dim_hidden)
    assert jnp.allclose(out, ref, atol=1e-4, rtol=1e-4), "mismatch (gridless path)"

    # 2) Batch-tiled path, batch divides evenly (512 -> tm=256, 2 grid steps).
    xl = jax.random.normal(jax.random.PRNGKey(1), (512, num_feat),
                           dtype=jnp.float32)
    out_l = jax.block_until_ready(binary_pattern_embedding(xl, weight, bias))
    ref_l = reference(xl, weight, bias)
    assert out_l.shape == (512, dim_hidden)
    assert jnp.allclose(out_l, ref_l, atol=1e-4, rtol=1e-4), "mismatch (tiled path)"

    # 3) Batch-tiled path, non-divisible tail (1000 -> tm=504, 2 grid steps,
    #    last block padded on read / dropped on write).
    xt = jax.random.normal(jax.random.PRNGKey(2), (1000, num_feat),
                           dtype=jnp.float32)
    out_t = jax.block_until_ready(binary_pattern_embedding(xt, weight, bias))
    ref_t = reference(xt, weight, bias)
    assert out_t.shape == (1000, dim_hidden)
    assert jnp.allclose(out_t, ref_t, atol=1e-4, rtol=1e-4), "mismatch (tail path)"

    print("KERNEL_OK")
</pallas_src>

<mosaic_0001>
module attributes {stable_mosaic.version = 11 : i64} {
  func.func @_linear_relu_kernel(%arg0: memref<8x16xf32, #tpu.memory_space<vmem>>, %arg1: memref<16x32xbf16, #tpu.memory_space<vmem>>, %arg2: memref<1x32xf32, #tpu.memory_space<vmem>>, %arg3: memref<8x32xf32, #tpu.memory_space<vmem>>) attributes {dimension_semantics = [], scalar_prefetch = 0 : i64, scratch_operands = 0 : i64, tpu.core_type = #tpu.core_type<tc>} {
    %c0 = arith.constant 0 : index
    %c0_0 = arith.constant 0 : index
    %0 = vector.load %arg0[%c0, %c0_0] : memref<8x16xf32, #tpu.memory_space<vmem>>, vector<8x16xf32>
    %1 = arith.truncf %0 : vector<8x16xf32> to vector<8x16xbf16>
    %c0_1 = arith.constant 0 : index
    %c0_2 = arith.constant 0 : index
    %2 = vector.load %arg1[%c0_1, %c0_2] : memref<16x32xbf16, #tpu.memory_space<vmem>>, vector<16x32xbf16>
    %cst = arith.constant dense<0.000000e+00> : vector<8x32xf32>
    %3 = tpu.matmul %1, %2, %cst {dimension_numbers = #tpu.dot_dimension_numbers<[1], [0], [0], [1], [0, 0, 1, 1], [], []>} : vector<8x16xbf16>, vector<16x32xbf16>, vector<8x32xf32> -> vector<8x32xf32>
    %c0_3 = arith.constant 0 : index
    %c0_4 = arith.constant 0 : index
    %4 = vector.load %arg2[%c0_3, %c0_4] : memref<1x32xf32, #tpu.memory_space<vmem>>, vector<1x32xf32>
    %5 = vector.broadcast %4 : vector<1x32xf32> to vector<8x32xf32>
    %6 = arith.addf %3, %5 : vector<8x32xf32>
    %cst_5 = arith.constant 0.000000e+00 : f32
    %7 = vector.broadcast %cst_5 : f32 to vector<8x32xf32>
    %8 = arith.maximumf %6, %7 : vector<8x32xf32>
    %c0_6 = arith.constant 0 : index
    %c0_7 = arith.constant 0 : index
    %9 = vector.load %arg3[%c0_6, %c0_7] : memref<8x32xf32, #tpu.memory_space<vmem>>, vector<8x32xf32>
    tpu.vector_store %arg3[%c0_6, %c0_7], %8 {strides = array<i32>} : memref<8x32xf32, #tpu.memory_space<vmem>>, vector<8x32xf32>,
    return
  }
}

</mosaic_0001>

<bundles_post_ra>
// kernel: tpu_custom_call.1
= control target key start
LH: loop header
LB: loop body
LE: loop exit
PB: predicated region body
PF: predicated region fallthrough
CT: control target
= control target key end

     0   :  { %8 = vsyncpa [#allocation3], 0  ;;  %s286_s0 = inlined_call_operand.hbm [shape: f32[8,16], index: 0, kind: input, shape index: {}]   ;;  %s287_s1 = inlined_call_operand.hbm [shape: bf16[16,32], index: 1, kind: input, shape index: {}]   ;;  %s288_s2 = inlined_call_operand.vmem [shape: f32[1,32], index: 2, kind: input, shape index: {}]   ;;  %s289_s3 = inlined_call_operand.hbm [shape: f32[8,32], index: 3, kind: output, shape index: {}]  }
   0x1   :  { %9 = vsyncpa [#allocation6], 0 }
   0x2   :  { %10 = vsyncpa [#allocation4], 0  ;;  %s213_s12 = smov [#allocation2]   ;;  %s214_s14 = smov [#allocation5]  }
   0x3   :  { %s17_s13 = sshll.u32 %s213_s12, 4  ;;  %s26_s15 = sshll.u32 %s214_s14, 4  ;;  %s18_s13 = int_to_ptr.vmem [resolvable:$true] %s17_s13  ;;  %s240_s15 = int_to_ptr.vmem [resolvable:$true] %s26_s15 }
   0x4   :  { %s141_s18 = scalar_lea.hbm %s286_s0, 128 }
   0x5   :  { %p142_p0 = scmp.ne.s32.totalorder %s286_s0, %s141_s18  ;;  %p145_p1 = scmp.lt.u32.totalorder %s141_s18, %s286_s0 }
   0x7   :  { %p147_p2 = pnand %p145_p1, %p142_p0 }
   0x9   :  { %150 = shalt.err (!%p147_p2)
}
   0xa   :  { %s151_s23 = scalar_lea.vmem %s18_s13, 128  ;;  %p156_p4 = scmp.lt.s32.totalorder %s18_s13, %s18_s13 }
   0xb   :  { %p152_p3 = scmp.ne.s32.totalorder %s18_s13, %s151_s23  ;;  %p157_p5 = scmp.lt.s32.totalorder %s151_s23, %s151_s23 }
   0xd   :  { %p158_p6 = por %p157_p5, %p156_p4 }
   0xf   :  { %p159_p7 = pnand %p158_p6, %p152_p3 }
  0x11   :  { %162 = shalt.err (!%p159_p7)
}
  0x12   :  { %20 = dma.hbm_to_vmem [thread:$0]  %s286_s0, 128, %s18_s13, [#allocation3]  }
  0x13   :  { %s163_s28 = scalar_lea.hbm %s287_s1, 128 }
  0x14   :  { %p164_p8 = scmp.ne.s32.totalorder %s287_s1, %s163_s28  ;;  %p167_p9 = scmp.lt.u32.totalorder %s163_s28, %s287_s1 }
  0x16   :  { %p169_p10 = pnand %p167_p9, %p164_p8 }
  0x18   :  { %172 = shalt.err (!%p169_p10)
}
  0x19   :  { %s173_s6 = scalar_lea.vmem %s240_s15, 128  ;;  %p178_p12 = scmp.lt.s32.totalorder %s240_s15, %s240_s15 }
  0x1a   :  { %p174_p11 = scmp.ne.s32.totalorder %s240_s15, %s173_s6  ;;  %p179_p13 = scmp.lt.s32.totalorder %s173_s6, %s173_s6 }
  0x1c   :  { %p180_p0 = por %p179_p13, %p178_p12 }
  0x1e   :  { %p181_p1 = pnand %p180_p0, %p174_p11 }
  0x20   :  { %184 = shalt.err (!%p181_p1)
}
  0x21   :  { %s215_s0 = smov 64   ;;  %s216_s7 = smov 4  }
  0x22   :  { %32 = dma.hbm_to_vmem [thread:$0]  %s287_s1, 128, %s240_s15, [#allocation6], %s215_s0, %s215_s0, %s216_s7  }
  0x23   :  { %207 = dma.done.wait [#allocation3], 128  }
  0x24   :  { %208 = vsyncadd [#allocation3], 4294967168 }
  0x25   :  { %209 = dma.done.wait [#allocation6], 128  }
  0x26   :  { %210 = vsyncadd [#allocation6], 4294967168  ;;  %v217_v0 = vmov 0.0   ;;  %vm218_vm0 = vmmov 0   ;;  %v140_v1 = vld [vmem:[#allocation5] sm:$0xff]   ;;  %v42_v2 = vld [vmem:[#allocation2] sm:$0xff] }
  0x27   :  { %127 = vmatprep.subr.bf16.mxu0 %v217_v0  ;;  %129 = vmatprep.mubr.msk.bf16.mxu0 %vm218_vm0, %v217_v0  ;;  %v43_v3 = vpack.c.bf16 %v42_v2, %v42_v2  ;;  %vm59_vm1 = vcmask 130048   ;;  %v122_v4 = vld [vmem:[%s288_s2] ss:$0 sm:$0xff]  ;;  %s219_s1 = smov [#allocation7]   ;;  %vm104_vm2 = vcmask 261120  }
  0x28   :  { %128 = vmatpush3.bf16.msra.mxu0 %v140_v1  ;;  %s112_s12 = sshll.u32 %s219_s1, 4  ;;  %s113_s12 = int_to_ptr.vmem [resolvable:$true] %s112_s12 }
  0x29   :  { %s185_s13 = scalar_lea.vmem %s113_s12, 128  ;;  %p190_p3 = scmp.lt.s32.totalorder %s113_s12, %s113_s12 }
  0x2a   :  { %p186_p2 = scmp.ne.s32.totalorder %s113_s12, %s185_s13  ;;  %p191_p4 = scmp.lt.s32.totalorder %s185_s13, %s185_s13 }
  0x2b   :  { %130 = vmatmul.mubr.msk.bf16.vlgmr.msra.gmra.mrb[0].mxu0 %vm59_vm1, %v43_v3 }
  0x2c   :  { %p192_p5 = por %p191_p4, %p190_p3 }
  0x2e   :  { %p193_p6 = pnand %p192_p5, %p186_p2 }
  0xfe   :  { %v97_v5 = vpop.f32.mrb[0].mxu0 }
  0xff   :  { %v98_v6 = vadd.f32 %v122_v4, %v97_v5  ;;  %v131_v7 = vpop.f32.mrb[1].mxu0 }
 0x100   :  { %v100_v8 = vpop.f32.mrb[2].mxu0 }
 0x101   :  { %v103_v9 = vmax.f32 %v98_v6, 0.0  ;;  %v132_v10 = vpop.f32.mrb[3].mxu0 }
 0x103   :  { %105 = vst.msk [vmem:[#allocation7] sm:$0xff] %vm104_vm2, %v103_v9 }
 0x104   :  { %196 = shalt.err (!%p193_p6)
}
 0x105   :  { %s197_s15 = scalar_lea.hbm %s289_s3, 128 }
 0x106   :  { %p198_p7 = scmp.ne.s32.totalorder %s289_s3, %s197_s15  ;;  %p201_p8 = scmp.lt.u32.totalorder %s197_s15, %s289_s3 }
 0x108   :  { %p203_p9 = pnand %p201_p8, %p198_p7 }
 0x10a   :  { %206 = shalt.err (!%p203_p9)
}
 0x10b   :  { %115 = dma.vmem_to_hbm [thread:$0]  %s113_s12, 128, %s289_s3, [#allocation4]  }
 0x10c   :  { %211 = dma.done.wait [#allocation4], 128  }
 0x10d   :  { %212 = vsyncadd [#allocation4], 4294967168 }
 0x10e   :  { %119 = vsyncpa [#allocation3], 1 }
 0x10f   :  { %120 = vsyncpa [#allocation6], 1 }
 0x110   :  { %121 = vsyncpa [#allocation4], 1 }

</bundles_post_ra>
